<compile_context>
chip_gen: v5e
topology: v5e:2x2
jax: 0.10.0
libtpu: 0.0.40
codegen_flags: <defaults>
</compile_context>

<pallas_src>
import math

import jax
import jax.numpy as jnp
from jax import lax
from jax.experimental import pallas as pl
from jax.experimental.pallas import tpu as pltpu


def _round_up(a: int, b: int) -> int:
    return ((a + b - 1) // b) * b


# ----------------------------------------------------------------------------
# Tile-level pairwise squared distance:  dot(-2*x, y) + |x|^2 + |y|^2
# ----------------------------------------------------------------------------
def _pdist_tile(x_ref, y_ref):
    x = x_ref[...]                                   # (TM, D), native dtype
    y = y_ref[...]                                   # (TN, D), native dtype
    xf = x.astype(jnp.float32)
    yf = y.astype(jnp.float32)
    xsq = jnp.sum(xf * xf, axis=1, keepdims=True)    # (TM, 1)  f32
    ysq = jnp.sum(yf * yf, axis=1)                   # (TN,)    f32
    # Contract over the last dim of both operands (no y.T materialization);
    # fold the -2 into the (smaller) x tile so the (TM, TN) epilogue is
    # add-only on the VPU. -2 is a power of two -> exact even in bf16.
    # TODO(synk): for very large D (>~2048) add a K grid axis + VMEM f32
    # accumulator instead of loading the full feature dim per tile.
    xy = lax.dot_general(
        x * jnp.asarray(-2.0, x.dtype), y,
        dimension_numbers=(((1,), (1,)), ((), ())),
        preferred_element_type=jnp.float32,
    )                                                # (TM, TN) f32 on the MXU
    return xy + xsq + ysq[None, :]


def _pdist_kernel(x_ref, y_ref, out_ref):
    out_ref[...] = _pdist_tile(x_ref, y_ref)


def _pdist_exp_kernel(scale_ref, x_ref, y_ref, out_ref):
    # Fused path: exp(scale * pdist), scale = -0.5 / sigma held in SMEM.
    out_ref[...] = jnp.exp(_pdist_tile(x_ref, y_ref) * scale_ref[0]).astype(
        out_ref.dtype)


def _exp_kernel(scale_ref, pdist_ref, out_ref):
    # Median path epilogue: single multiply (VPU) + exp (EUP), no divide.
    out_ref[...] = jnp.exp(pdist_ref[...] * scale_ref[0])


def _median_flat(flat):
    # Matches the PyTorch helper: median of the flattened tensor, averaging the
    # two middle elements when the length is even.
    # TODO(synk): full jnp.sort of N*M values stays in plain JAX (no Pallas sort
    # primitive); for huge N*M an approximate/sampled quantile would be needed.
    s = jnp.sort(flat)
    n = flat.shape[0]
    mid = n // 2
    if n % 2 == 0:
        return (s[mid] + s[mid - 1]) * 0.5
    return s[mid]


def rbf_forward(x, y=None, band_width=None, *, tm=256, tn=512):
    """Pallas implementation of RBF.forward(x, y)."""
    if y is None:
        y = x
    N, D = x.shape
    M, Dy = y.shape
    assert D == Dy
    out_dtype = x.dtype

    # Tile sizes: sublane-aligned rows, lane-dense (multiple-of-128) columns.
    # 256 x 512 f32 output tiles keep double-buffered working sets well inside
    # v7x's 32 MiB scoped VMEM and are 128/256-aligned for v5e/v6e/v7x MXUs.
    TM = tm if N >= tm else _round_up(N, 8)
    TN = tn if M >= tn else _round_up(M, 128)
    Np = _round_up(N, TM)
    Mp = _round_up(M, TN)

    xp = x if Np == N else jnp.pad(x, ((0, Np - N), (0, 0)))
    yp = y if Mp == M else jnp.pad(y, ((0, Mp - M), (0, 0)))

    grid = (Np // TM, Mp // TN)
    x_spec = pl.BlockSpec((TM, D), lambda i, j: (i, 0))
    y_spec = pl.BlockSpec((TN, D), lambda i, j: (j, 0))
    o_spec = pl.BlockSpec((TM, TN), lambda i, j: (i, j))
    smem_spec = pl.BlockSpec(memory_space=pltpu.MemorySpace.SMEM)
    cparams = pltpu.CompilerParams(
        dimension_semantics=("parallel", "parallel"))

    isz = jnp.dtype(x.dtype).itemsize
    pdist_bytes = isz * (Np * D + Mp * D) + 4 * Np * Mp
    pdist_flops = 2 * Np * Mp * D + 3 * Np * Mp

    if band_width is not None:
        # Fused pdist + exp: one pass over x/y, one write of the (N, M) matrix,
        # emitted directly in the input dtype.
        sigma = jnp.asarray(band_width, jnp.float32) ** 2
        scale = jnp.reshape(-0.5 / sigma, (1,)).astype(jnp.float32)
        out_p = pl.pallas_call(
            _pdist_exp_kernel,
            out_shape=jax.ShapeDtypeStruct((Np, Mp), out_dtype),
            grid=grid,
            in_specs=[smem_spec, x_spec, y_spec],
            out_specs=o_spec,
            compiler_params=cparams,
            cost_estimate=pl.CostEstimate(
                flops=pdist_flops + Np * Mp,
                transcendentals=Np * Mp,
                bytes_accessed=isz * (Np * D + Mp * D) + isz * Np * Mp),
        )(scale, xp, yp)
        return out_p[:N, :M]

    # band_width is None: materialize pdist (f32 for a faithful median), take
    # the median (plain JAX sort), then a tiled elementwise exp pass that
    # updates the pdist buffer in place.
    pdist_p = pl.pallas_call(
        _pdist_kernel,
        out_shape=jax.ShapeDtypeStruct((Np, Mp), jnp.float32),
        grid=grid,
        in_specs=[x_spec, y_spec],
        out_specs=o_spec,
        compiler_params=cparams,
        cost_estimate=pl.CostEstimate(
            flops=pdist_flops, transcendentals=0, bytes_accessed=pdist_bytes),
    )(xp, yp)

    med = _median_flat(pdist_p[:N, :M].reshape(-1))
    sigma = med / (2.0 * math.log(N + 1))
    # NOTE: inherits the reference's behavior if sigma ~ 0 (divide blows up).
    scale = jnp.reshape((-0.5 / sigma).astype(jnp.float32), (1,))

    out_p = pl.pallas_call(
        _exp_kernel,
        out_shape=jax.ShapeDtypeStruct((Np, Mp), jnp.float32),
        grid=grid,
        in_specs=[smem_spec, o_spec],
        out_specs=o_spec,
        input_output_aliases={1: 0},          # exp written over pdist in place
        compiler_params=cparams,
        cost_estimate=pl.CostEstimate(
            flops=Np * Mp, transcendentals=Np * Mp,
            bytes_accessed=8 * Np * Mp),
    )(scale, pdist_p)
    out = out_p[:N, :M]
    return out if out_dtype == jnp.float32 else out.astype(out_dtype)


def _reference(x, y=None, band_width=None):
    # Pure-JAX reference for a sanity check (mirrors the PyTorch module).
    if y is None:
        y = x
    xf = x.astype(jnp.float32)
    yf = y.astype(jnp.float32)
    pdist = (
        jnp.sum(xf**2, axis=1, keepdims=True)
        + jnp.sum(yf**2, axis=1)
        - 2.0 * xf @ yf.T
    )
    if band_width is None:
        flat = jnp.sort(pdist.reshape(-1))
        n = flat.shape[0]
        mid = n // 2
        med = (flat[mid] + flat[mid - 1]) * 0.5 if n % 2 == 0 else flat[mid]
        sigma = med / (2.0 * math.log(x.shape[0] + 1))
    else:
        sigma = band_width**2
    return jnp.exp(-0.5 * pdist / sigma)


if __name__ == "__main__":
    key = jax.random.PRNGKey(0)
    kx, ky, ka, kb = jax.random.split(key, 4)

    # Case 1: small self-kernel, median bandwidth heuristic (two-pass path).
    N, M, D = 8, 8, 32
    x = jax.random.normal(kx, (N, D), dtype=jnp.float32)
    y = jax.random.normal(ky, (M, D), dtype=jnp.float32)
    out_self = jax.block_until_ready(rbf_forward(x))
    ref_self = _reference(x)

    # Case 2: explicit band_width, distinct y (fused pdist+exp kernel).
    out_xy = jax.block_until_ready(rbf_forward(x, y, band_width=1.5))
    ref_xy = _reference(x, y, band_width=1.5)

    # Case 3: non-aligned shapes to exercise row padding + tiling (both paths).
    N2, M2, D2 = 40, 200, 48
    a = jax.random.normal(ka, (N2, D2), dtype=jnp.float32)
    b = jax.random.normal(kb, (M2, D2), dtype=jnp.float32)
    out_bw = jax.block_until_ready(rbf_forward(a, b, band_width=2.0))
    ref_bw = _reference(a, b, band_width=2.0)
    out_med = jax.block_until_ready(rbf_forward(a, b))
    ref_med = _reference(a, b)

    assert out_self.shape == (N, N) and out_xy.shape == (N, M)
    assert out_bw.shape == (N2, M2) and out_med.shape == (N2, M2)
    assert jnp.allclose(out_self, ref_self, atol=1e-5, rtol=1e-4)
    assert jnp.allclose(out_xy, ref_xy, atol=1e-5, rtol=1e-4)
    assert jnp.allclose(out_bw, ref_bw, atol=1e-5, rtol=1e-4)
    assert jnp.allclose(out_med, ref_med, atol=1e-5, rtol=1e-4)
    print("KERNEL_OK")
</pallas_src>

<mosaic_0001>
module attributes {stable_mosaic.version = 11 : i64} {
  func.func @_pdist_kernel(%arg0: i32, %arg1: i32, %arg2: memref<8x32xf32, #tpu.memory_space<vmem>>, %arg3: memref<128x32xf32, #tpu.memory_space<vmem>>, %arg4: memref<8x128xf32, #tpu.memory_space<vmem>>) attributes {dimension_semantics = [#tpu.dimension_semantics<parallel>, #tpu.dimension_semantics<parallel>], iteration_bounds = array<i64: 1, 1>, scalar_prefetch = 0 : i64, scratch_operands = 0 : i64, tpu.core_type = #tpu.core_type<tc>, window_params = [{transform_indices = @transform_0, window_bounds = array<i64: 8, 32>}, {transform_indices = @transform_1, window_bounds = array<i64: 128, 32>}, {transform_indices = @transform_2, window_bounds = array<i64: 8, 128>}]} {
    %c0 = arith.constant 0 : index
    %c0_0 = arith.constant 0 : index
    %0 = vector.load %arg2[%c0, %c0_0] : memref<8x32xf32, #tpu.memory_space<vmem>>, vector<8x32xf32>
    %c0_1 = arith.constant 0 : index
    %c0_2 = arith.constant 0 : index
    %1 = vector.load %arg3[%c0_1, %c0_2] : memref<128x32xf32, #tpu.memory_space<vmem>>, vector<128x32xf32>
    %2 = arith.mulf %0, %0 : vector<8x32xf32>
    %cst = arith.constant dense<0.000000e+00> : vector<8xf32>
    %3 = vector.multi_reduction <add>, %2, %cst [1] : vector<8x32xf32> to vector<8xf32>
    %4 = vector.shape_cast %3 : vector<8xf32> to vector<8x1xf32>
    %5 = arith.mulf %1, %1 : vector<128x32xf32>
    %cst_3 = arith.constant dense<0.000000e+00> : vector<128xf32>
    %6 = vector.multi_reduction <add>, %5, %cst_3 [1] : vector<128x32xf32> to vector<128xf32>
    %cst_4 = arith.constant -2.000000e+00 : f32
    %7 = vector.broadcast %cst_4 : f32 to vector<8x32xf32>
    %8 = arith.mulf %0, %7 : vector<8x32xf32>
    %cst_5 = arith.constant dense<0.000000e+00> : vector<8x128xf32>
    %9 = tpu.matmul %8, %1, %cst_5 {dimension_numbers = #tpu.dot_dimension_numbers<[1], [1], [0], [0], [0, 0, 1, 0], [], []>} : vector<8x32xf32>, vector<128x32xf32>, vector<8x128xf32> -> vector<8x128xf32>
    %10 = vector.broadcast %4 : vector<8x1xf32> to vector<8x128xf32>
    %11 = arith.addf %9, %10 : vector<8x128xf32>
    %12 = vector.shape_cast %6 : vector<128xf32> to vector<1x128xf32>
    %13 = vector.broadcast %12 : vector<1x128xf32> to vector<8x128xf32>
    %14 = arith.addf %11, %13 : vector<8x128xf32>
    %c0_6 = arith.constant 0 : index
    %c0_7 = arith.constant 0 : index
    %15 = vector.load %arg4[%c0_6, %c0_7] : memref<8x128xf32, #tpu.memory_space<vmem>>, vector<8x128xf32>
    tpu.vector_store %arg4[%c0_6, %c0_7], %14 {strides = array<i32>} : memref<8x128xf32, #tpu.memory_space<vmem>>, vector<8x128xf32>,
    return
  }
  func.func @transform_0(%arg0: i32, %arg1: i32) -> (i32, i32) {
    %c0_i32 = arith.constant 0 : i32
    %c0_i32_0 = arith.constant 0 : i32
    return %arg0, %c0_i32 : i32, i32
  }
  func.func @transform_1(%arg0: i32, %arg1: i32) -> (i32, i32) {
    %c0_i32 = arith.constant 0 : i32
    %c0_i32_0 = arith.constant 0 : i32
    return %arg1, %c0_i32 : i32, i32
  }
  func.func @transform_2(%arg0: i32, %arg1: i32) -> (i32, i32) {
    %c0_i32 = arith.constant 0 : i32
    return %arg0, %arg1 : i32, i32
  }
}

</mosaic_0001>

<bundles_post_ra>
// kernel: tpu_custom_call.1
= control target key start
LH: loop header
LB: loop body
LE: loop exit
PB: predicated region body
PF: predicated region fallthrough
CT: control target
= control target key end

     0   :  { %vm30_vm0 = vcmask 261120   ;;  %s476_s0 = inlined_call_operand.vmem [shape: f32[8,32], index: 0, kind: input, shape index: {}]   ;;  %s477_s1 = inlined_call_operand.vmem [shape: f32[128,32], index: 1, kind: input, shape index: {}]   ;;  %s478_s2 = inlined_call_operand.hbm [shape: f32[8,128], index: 2, kind: output, shape index: {}]  }
   0x1   :  { %v343_v0 = vld [vmem:[%s477_s1 + $0x78] sm:$0xff]  ;;  %v348_v1 = vld [vmem:[%s477_s1] sm:$0xff]  ;;  %v357_v3 = vld [vmem:[%s477_s1 + $0x10] sm:$0xff] }
   0x2   :  { %280 = vmatpush.xpose.msk.msra.mxu0 %vm30_vm0, %v343_v0  ;;  %v34_v2 = vmul.f32 %v348_v1, %v348_v1  ;;  %v27_v4 = vld [vmem:[%s477_s1 + $0x70] sm:$0xff]  ;;  %v36_v5 = vmul.f32 %v357_v3, %v357_v3  ;;  %v367_v6 = vld [vmem:[%s477_s1 + $0x20] sm:$0xff]  ;;  %v372_v7 = vld [vmem:[%s477_s1 + $0x8] sm:$0xff] }
   0x3   :  { %v38_v9 = vmul.f32 %v367_v6, %v367_v6  ;;  %v380_v10 = vld [vmem:[%s477_s1 + $0x18] sm:$0xff]  ;;  %v18_v12 = vld [vmem:[%s477_s1 + $0x28] sm:$0xff]  ;;  %v35_v14 = vmul.f32 %v372_v7, %v372_v7 }
   0x4   :  { %v50_v8 = vsel %vm30_vm0, %v34_v2, 0.0  ;;  %v56_v11 = vsel %vm30_vm0, %v36_v5, 0.0 }
   0x5   :  { %51 = vadd.xlane.f32.xlu0 %v50_v8  ;;  %57 = vadd.xlane.f32.xlu1 %v56_v11  ;;  %v62_v13 = vsel %vm30_vm0, %v38_v9, 0.0 }
   0x6   :  { %281 = vmatpush.xpose.msk.msra.mxu0 %vm30_vm0, %v27_v4 }
   0x7   :  { %7 = vsyncpa [#allocation3], 0  ;;  %v26_v15 = vld [vmem:[%s477_s1 + $0x68] sm:$0xff]  ;;  %63 = vadd.xlane.f32.xlu2 %v62_v13  ;;  %v37_v16 = vmul.f32 %v380_v10, %v380_v10  ;;  %v39_v17 = vmul.f32 %v18_v12, %v18_v12  ;;  %v53_v18 = vsel %vm30_vm0, %v35_v14, 0.0  ;;  %v25_v19 = vld [vmem:[%s477_s1 + $0x60] sm:$0xff]  ;;  %v48_v42 = vmul.f32 %v27_v4, %v27_v4  ;;  %s271_s17 = sshll.u32 %s478_s2, 4  ;;  %s272_s17 = int_to_ptr.hbm [resolvable:$true] %s271_s17 }
   0x8   :  { %v19_v21 = vld [vmem:[%s477_s1 + $0x30] sm:$0xff]  ;;  %v20_v23 = vld [vmem:[%s477_s1 + $0x38] sm:$0xff]  ;;  %v21_v24 = vld [vmem:[%s477_s1 + $0x40] sm:$0xff]  ;;  %v46_v40 = vmul.f32 %v25_v19, %v25_v19  ;;  %v47_v41 = vmul.f32 %v26_v15, %v26_v15  ;;  %v49_v46 = vmul.f32 %v343_v0, %v343_v0  ;;  %v186_v52 = vlaneseq }
   0x9   :  { %v59_v20 = vsel %vm30_vm0, %v37_v16, 0.0  ;;  %v65_v22 = vsel %vm30_vm0, %v39_v17, 0.0  ;;  %v40_v25 = vmul.f32 %v19_v21, %v19_v21  ;;  %v24_v26 = vld [vmem:[%s477_s1 + $0x58] sm:$0xff]  ;;  %v41_v27 = vmul.f32 %v20_v23, %v20_v23  ;;  %v23_v30 = vld [vmem:[%s477_s1 + $0x50] sm:$0xff]  ;;  %v22_v33 = vld [vmem:[%s477_s1 + $0x48] sm:$0xff] }
   0xa   :  { %282 = vmatpush.xpose.msk.msra.mxu0 %vm30_vm0, %v26_v15  ;;  %v42_v28 = vmul.f32 %v21_v24, %v21_v24  ;;  %v43_v34 = vmul.f32 %v22_v33, %v22_v33  ;;  %v44_v35 = vmul.f32 %v23_v30, %v23_v30  ;;  %v45_v36 = vmul.f32 %v24_v26, %v24_v26  ;;  %v12_v47 = vld [vmem:[%s476_s0] sm:$0xff]  ;;  %s324_s0 = smov [#allocation2]  }
   0xb   :  { %v68_v29 = vsel %vm30_vm0, %v40_v25, 0.0  ;;  %v71_v31 = vsel %vm30_vm0, %v41_v27, 0.0  ;;  %v86_v43 = vsel %vm30_vm0, %v46_v40, 0.0  ;;  %v89_v44 = vsel %vm30_vm0, %v47_v41, 0.0  ;;  %s269_s14 = sshll.u32 %s324_s0, 4  ;;  %s270_s14 = int_to_ptr.vmem [resolvable:$true] %s269_s14 }
   0xc   :  { %v74_v32 = vsel %vm30_vm0, %v42_v28, 0.0  ;;  %v77_v37 = vsel %vm30_vm0, %v43_v34, 0.0  ;;  %v80_v38 = vsel %vm30_vm0, %v44_v35, 0.0  ;;  %v83_v39 = vsel %vm30_vm0, %v45_v36, 0.0 }
   0xd   :  { %54 = vadd.xlane.f32.xlu0 %v53_v18  ;;  %60 = vadd.xlane.f32.xlu1 %v59_v20  ;;  %v92_v45 = vsel %vm30_vm0, %v48_v42, 0.0  ;;  %v29_v48 = vmul.f32 %v12_v47, %v12_v47  ;;  %v95_v49 = vsel %vm30_vm0, %v49_v46, 0.0  ;;  %v98_v51 = vmul.f32 -2.0, %v12_v47 }
   0xe   :  { %283 = vmatpush.xpose.msk.msra.mxu0 %vm30_vm0, %v25_v19  ;;  %v455_v54 = vand.u32 127, %v186_v52  ;;  %vm191_vm1 = vcmask 130112   ;;  %vm195_vm2 = vcmask 195712   ;;  %vm199_vm3 = vcmask 261312  }
   0xf   :  { %66 = vadd.xlane.f32.xlu2 %v65_v22  ;;  %v31_v50 = vsel %vm30_vm0, %v29_v48, 0.0  ;;  %vm203_vm4 = vcmask 326912   ;;  %vm207_vm5 = vcmask 392512   ;;  %vm211_vm6 = vcmask 458112  }
  0x10   :  { %v189_v57 = vadd.s32 4294967288, %v455_v54  ;;  %v193_v58 = vadd.s32 4294967280, %v455_v54  ;;  %v197_v62 = vadd.s32 4294967272, %v455_v54  ;;  %v201_v2 = vadd.s32 4294967264, %v455_v54 }
  0x11   :  { %v213_v14 = vadd.s32 4294967240, %v455_v54  ;;  %v217_v18 = vadd.s32 4294967232, %v455_v54  ;;  %vm215_vm7 = vcmask 523712   ;;  %v221_v22 = vadd.s32 4294967224, %v455_v54 }
  0x12   :  { %284 = vmatpush.xpose.msk.msra.mxu0 %vm30_vm0, %v24_v26  ;;  %vm219_vm8 = vcmask 589312   ;;  %v225_v25 = vadd.s32 4294967216, %v455_v54  ;;  %vm223_vm9 = vcmask 654912   ;;  %vm227_vm10 = vcmask 720512  }
  0x13   :  { %vm231_vm11 = vcmask 786112   ;;  %vm235_vm12 = vcmask 851712   ;;  %v241_v41 = vadd.s32 4294967184, %v455_v54  ;;  %vm239_vm13 = vcmask 917312  }
  0x14   :  { %vm243_vm14 = vcmask 982912   ;;  %vm247_vm15 = vcmask 1048512  }
  0x15   :  { %69 = vadd.xlane.f32.xlu0 %v68_v29  ;;  %72 = vadd.xlane.f32.xlu1 %v71_v31  ;;  %v229_v29 = vadd.s32 4294967208, %v455_v54 }
  0x16   :  { %285 = vmatpush.xpose.msk.msra.mxu0 %vm30_vm0, %v23_v30 }
  0x17   :  { %75 = vadd.xlane.f32.xlu2 %v74_v32 }
  0x1a   :  { %286 = vmatpush.xpose.msk.msra.mxu0 %vm30_vm0, %v22_v33  ;;  %v233_v33 = vadd.s32 4294967200, %v455_v54 }
  0x1d   :  { %78 = vadd.xlane.f32.xlu0 %v77_v37  ;;  %81 = vadd.xlane.f32.xlu1 %v80_v38  ;;  %v237_v37 = vadd.s32 4294967192, %v455_v54 }
  0x1e   :  { %287 = vmatpush.xpose.msk.msra.mxu0 %vm30_vm0, %v21_v24 }
  0x1f   :  { %84 = vadd.xlane.f32.xlu2 %v83_v39 }
  0x22   :  { %288 = vmatpush.xpose.msk.msra.mxu0 %vm30_vm0, %v20_v23 }
  0x25   :  { %87 = vadd.xlane.f32.xlu0 %v86_v43  ;;  %90 = vadd.xlane.f32.xlu1 %v89_v44 }
  0x26   :  { %289 = vmatpush.xpose.msk.msra.mxu0 %vm30_vm0, %v19_v21 }
  0x27   :  { %93 = vadd.xlane.f32.xlu2 %v92_v45  ;;  %v245_v45 = vadd.s32 4294967176, %v455_v54 }
  0x2a   :  { %290 = vmatpush.xpose.msk.msra.mxu0 %vm30_vm0, %v18_v12 }
  0x2d   :  { %96 = vadd.xlane.f32.xlu0 %v95_v49  ;;  %32 = vadd.xlane.f32.xlu1 %v31_v50 }
  0x2e   :  { %291 = vmatpush.xpose.msk.msra.mxu0 %vm30_vm0, %v367_v6  ;;  %v205_v6 = vadd.s32 4294967256, %v455_v54 }
  0x32   :  { %292 = vmatpush.xpose.msk.msra.mxu0 %vm30_vm0, %v380_v10  ;;  %v209_v10 = vadd.s32 4294967248, %v455_v54 }
  0x36   :  { %293 = vmatpush.xpose.msk.msra.mxu0 %vm30_vm0, %v357_v3 }
  0x3a   :  { %294 = vmatpush.xpose.msk.msra.mxu0 %vm30_vm0, %v372_v7 }
  0x3e   :  { %295 = vmatpush.xpose.msk.msra.mxu0 %vm30_vm0, %v348_v1 }
  0x41   :  { %296 = vmatmul.msk.f32.vlgmr.msra.gmra.mxu0 %vm30_vm0, %v98_v51 }
  0x78   :  { %v52_v53 = vpop.xlane.xlu0 %51  ;;  %v58_v55 = vpop.xlane.xlu1 %57 }
  0x79   :  { %v188_v60 = vperm.slane %v52_v53, %v455_v54  ;;  %v194_v63 = vperm.slane %v58_v55, %v193_v58 }
  0x7a   :  { %v64_v56 = vpop.xlane.xlu2 %63 }
  0x7b   :  { %v202_v7 = vperm.slane %v64_v56, %v201_v2 }
  0x80   :  { %v55_v59 = vpop.xlane.xlu0 %54  ;;  %v61_v0 = vpop.xlane.xlu1 %60 }
  0x81   :  { %v190_v61 = vperm.slane %v55_v59, %v189_v57  ;;  %v198_v3 = vperm.slane %v61_v0, %v197_v62 }
  0x82   :  { %v67_v4 = vpop.xlane.xlu2 %66 }
  0x83   :  { %v192_v1 = vsel %vm191_vm1, %v190_v61, %v188_v60  ;;  %v206_v11 = vperm.slane %v67_v4, %v205_v6 }
  0x84   :  { %v196_v5 = vsel %vm195_vm2, %v194_v63, %v192_v1 }
  0x85   :  { %v200_v9 = vsel %vm199_vm3, %v198_v3, %v196_v5 }
  0x86   :  { %v204_v12 = vsel %vm203_vm4, %v202_v7, %v200_v9 }
  0x87   :  { %v208_v16 = vsel %vm207_vm5, %v206_v11, %v204_v12 }
  0x88   :  { %v70_v8 = vpop.xlane.xlu0 %69  ;;  %v73_v13 = vpop.xlane.xlu1 %72 }
  0x89   :  { %v210_v15 = vperm.slane %v70_v8, %v209_v10  ;;  %v214_v19 = vperm.slane %v73_v13, %v213_v14 }
  0x8a   :  { %v76_v17 = vpop.xlane.xlu2 %75 }
  0x8b   :  { %v212_v20 = vsel %vm211_vm6, %v210_v15, %v208_v16  ;;  %v218_v23 = vperm.slane %v76_v17, %v217_v18 }
  0x8c   :  { %v216_v24 = vsel %vm215_vm7, %v214_v19, %v212_v20 }
  0x8d   :  { %v220_v28 = vsel %vm219_vm8, %v218_v23, %v216_v24 }
  0x90   :  { %v79_v21 = vpop.xlane.xlu0 %78  ;;  %v82_v26 = vpop.xlane.xlu1 %81 }
  0x91   :  { %v222_v27 = vperm.slane %v79_v21, %v221_v22  ;;  %v226_v31 = vperm.slane %v82_v26, %v225_v25 }
  0x92   :  { %v85_v30 = vpop.xlane.xlu2 %84 }
  0x93   :  { %v224_v32 = vsel %vm223_vm9, %v222_v27, %v220_v28  ;;  %v230_v35 = vperm.slane %v85_v30, %v229_v29 }
  0x94   :  { %v228_v36 = vsel %vm227_vm10, %v226_v31, %v224_v32 }
  0x95   :  { %v232_v40 = vsel %vm231_vm11, %v230_v35, %v228_v36 }
  0x98   :  { %v88_v34 = vpop.xlane.xlu0 %87  ;;  %v91_v39 = vpop.xlane.xlu1 %90 }
  0x99   :  { %v234_v38 = vperm.slane %v88_v34, %v233_v33  ;;  %v238_v42 = vperm.slane %v91_v39, %v237_v37 }
  0x9a   :  { %v94_v43 = vpop.xlane.xlu2 %93 }
  0x9b   :  { %v236_v44 = vsel %vm235_vm12, %v234_v38, %v232_v40  ;;  %v242_v46 = vperm.slane %v94_v43, %v241_v41 }
  0x9c   :  { %v240_v48 = vsel %vm239_vm13, %v238_v42, %v236_v44 }
  0x9d   :  { %v244_v51 = vsel %vm243_vm14, %v242_v46, %v240_v48 }
  0xa0   :  { %v97_v47 = vpop.xlane.xlu0 %96  ;;  %v33_v50 = vpop.xlane.xlu1 %32 }
  0xa1   :  { %v246_v49 = vperm.slane %v97_v47, %v245_v45 }
  0xa3   :  { %v248_v55 = vsel %vm247_vm15, %v246_v49, %v244_v51 }
  0xbe   :  { %v167_v52 = vpop.f32.mrf.mxu0 }
  0xbf   :  { %v168_v53 = vadd.f32 %v167_v52, %v33_v50 }
  0xc1   :  { %v262_v56 = vadd.f32 %v248_v55, %v168_v53 }
  0xc3   :  { %263 = vst [vmem:[#allocation2] sm:$0xff] %v262_v56 }
  0xc4   :  { %274 = dma.vmem_to_hbm [thread:$0]  %s270_s14, 128, %s272_s17, [#allocation3]  }
  0xc5   :  { %322 = dma.done.wait [#allocation3], 128  }
  0xc6   :  { %323 = vsyncadd [#allocation3], 4294967168 }
  0xc7   :  { %279 = vsyncpa [#allocation3], 1 }

</bundles_post_ra>
